<compile_context>
chip_gen: v7x
topology: tpu7x:2x2x1
jax: 0.10.0
libtpu: 0.0.40
codegen_flags: <defaults>
</compile_context>

<pallas_src>
import functools

import jax
import jax.numpy as jnp
from jax import lax
from jax.experimental import pallas as pl
from jax.experimental.pallas import tpu as pltpu


def attention_kernel(x_ref, w_ref, b_ref, o_ref, *, time_steps: int):
    # x_ref : (B*T, C)  input rows, batch-major (row r -> batch r // T)
    # w_ref : (C, C)    PyTorch Linear weight layout (out_features, in_features)
    # b_ref : (1, C)    bias
    # o_ref : (B*T, C)  output = x * mean_t(softmax_c(fc(x)))
    x = x_ref[...]
    bt = x.shape[0]
    t = time_steps

    # a = fc(x) = x @ W^T + b  (contract channel dims directly, no transpose)
    a = lax.dot_general(
        x, w_ref[...],
        dimension_numbers=(((1,), (1,)), ((), ())),
        preferred_element_type=jnp.float32,
    ) + b_ref[...]                                              # (B*T, C)

    # softmax over channels (dim=2 of the PyTorch module) — exact divide
    a = a - jnp.max(a, axis=-1, keepdims=True)
    e = jnp.exp(a)
    p = e / jnp.sum(e, axis=-1, keepdims=True)

    # Per-batch mean over time, already replicated across the T rows of each
    # batch, as one matmul against an in-kernel generated group-average matrix
    #   G[r, r'] = (batch(r) == batch(r')) / T.
    # Batch ids are derived with a float floor trick (iota -> (r + 0.5) / T),
    # which avoids vector integer division and is exact for these magnitudes.
    inv_t = jnp.float32(1.0 / t)
    row = lax.broadcasted_iota(jnp.int32, (bt, bt), 0).astype(jnp.float32)
    col = lax.broadcasted_iota(jnp.int32, (bt, bt), 1).astype(jnp.float32)
    row_b = jnp.floor((row + 0.5) * inv_t)
    col_b = jnp.floor((col + 0.5) * inv_t)
    g = jnp.where(row_b == col_b, inv_t, jnp.float32(0.0))      # (B*T, B*T)
    m = jnp.dot(g, p, preferred_element_type=jnp.float32)       # (B*T, C)

    # x * mean-attention, stored directly in the natural (B*T, C) layout
    o_ref[...] = (x * m).astype(o_ref.dtype)


def attention_module(x, w, bias):
    """x: (B, T, C) f32, w: (C, C) PyTorch-style weight (out, in), bias: (C,)."""
    B, T, C = x.shape
    dt = x.dtype

    x2 = x.reshape(B * T, C)        # contiguous reshape, free in XLA
    b2 = bias.reshape(1, C)

    out_flat = pl.pallas_call(
        functools.partial(attention_kernel, time_steps=T),
        out_shape=jax.ShapeDtypeStruct((B * T, C), dt),
        # Gridless: whole arrays land in VMEM once — no pipeline machinery,
        # no double-buffering, no per-step overhead.  Total VMEM footprint is
        # a few KiB, so no vmem_limit override is needed on any generation.
        in_specs=[
            pl.BlockSpec(memory_space=pltpu.MemorySpace.VMEM),
            pl.BlockSpec(memory_space=pltpu.MemorySpace.VMEM),
            pl.BlockSpec(memory_space=pltpu.MemorySpace.VMEM),
        ],
        out_specs=pl.BlockSpec(memory_space=pltpu.MemorySpace.VMEM),
    )(x2, w, b2)

    return out_flat.reshape(B, T, C)


def reference(x, w, bias):
    a = jnp.einsum("btc,oc->bto", x, w) + bias
    a = jax.nn.softmax(a, axis=2)
    a = jnp.mean(a, axis=1, keepdims=True)
    return x * a


if __name__ == "__main__":
    # Shapes implied by the module: input_shape = (channels, time_steps),
    # forward x: (batch, time_steps, channels).
    B, T, C = 2, 8, 32
    key = jax.random.PRNGKey(0)
    kx, kw, kb = jax.random.split(key, 3)

    x = jax.random.normal(kx, (B, T, C), dtype=jnp.float32)
    # fc.weight ~ truncnorm(0, 10, scale=0.1)
    w = 0.1 * jax.random.truncated_normal(kw, 0.0, 10.0, (C, C), dtype=jnp.float32)
    # fc.bias: PyTorch default uniform(-1/sqrt(C), 1/sqrt(C))
    bound = 1.0 / jnp.sqrt(jnp.float32(C))
    bias = jax.random.uniform(kb, (C,), minval=-bound, maxval=bound, dtype=jnp.float32)

    out = jax.jit(attention_module)(x, w, bias)
    jax.block_until_ready(out)

    ref = reference(x, w, bias)
    assert out.shape == (B, T, C)
    # Softmax reciprocal is now exact; remaining tolerance only covers MXU
    # f32 matmul pass differences vs. the XLA reference einsum.
    assert jnp.allclose(out, ref, atol=1e-3, rtol=1e-3), "mismatch vs reference"

    print("KERNEL_OK")
</pallas_src>

<mosaic_0001>
module attributes {stable_mosaic.version = 11 : i64} {
  func.func @attention_kernel(%arg0: memref<16x32xf32, #tpu.memory_space<vmem>>, %arg1: memref<32x32xf32, #tpu.memory_space<vmem>>, %arg2: memref<1x32xf32, #tpu.memory_space<vmem>>, %arg3: memref<16x32xf32, #tpu.memory_space<vmem>>) attributes {dimension_semantics = [], scalar_prefetch = 0 : i64, scratch_operands = 0 : i64, tpu.core_type = #tpu.core_type<tc>} {
    %c0 = arith.constant 0 : index
    %c0_0 = arith.constant 0 : index
    %0 = vector.load %arg0[%c0, %c0_0] : memref<16x32xf32, #tpu.memory_space<vmem>>, vector<16x32xf32>
    %c0_1 = arith.constant 0 : index
    %c0_2 = arith.constant 0 : index
    %1 = vector.load %arg1[%c0_1, %c0_2] : memref<32x32xf32, #tpu.memory_space<vmem>>, vector<32x32xf32>
    %cst = arith.constant dense<0.000000e+00> : vector<16x32xf32>
    %2 = tpu.matmul %0, %1, %cst {dimension_numbers = #tpu.dot_dimension_numbers<[1], [1], [0], [0], [0, 0, 1, 0], [], []>} : vector<16x32xf32>, vector<32x32xf32>, vector<16x32xf32> -> vector<16x32xf32>
    %c0_3 = arith.constant 0 : index
    %c0_4 = arith.constant 0 : index
    %3 = vector.load %arg2[%c0_3, %c0_4] : memref<1x32xf32, #tpu.memory_space<vmem>>, vector<1x32xf32>
    %4 = vector.broadcast %3 : vector<1x32xf32> to vector<16x32xf32>
    %5 = arith.addf %2, %4 : vector<16x32xf32>
    %cst_5 = arith.constant dense<0xFF800000> : vector<16xf32>
    %6 = vector.multi_reduction <maximumf>, %5, %cst_5 [1] : vector<16x32xf32> to vector<16xf32>
    %7 = vector.shape_cast %6 : vector<16xf32> to vector<16x1xf32>
    %8 = vector.broadcast %7 : vector<16x1xf32> to vector<16x32xf32>
    %9 = arith.subf %5, %8 : vector<16x32xf32>
    %10 = math.exp %9 : vector<16x32xf32>
    %cst_6 = arith.constant dense<0.000000e+00> : vector<16xf32>
    %11 = vector.multi_reduction <add>, %10, %cst_6 [1] : vector<16x32xf32> to vector<16xf32>
    %12 = vector.shape_cast %11 : vector<16xf32> to vector<16x1xf32>
    %13 = vector.broadcast %12 : vector<16x1xf32> to vector<16x32xf32>
    %14 = arith.divf %10, %13 : vector<16x32xf32>
    %15 = tpu.iota {dimensions = array<i32: 0>} : vector<16x16xi32>
    %16 = arith.sitofp %15 : vector<16x16xi32> to vector<16x16xf32>
    %17 = tpu.iota {dimensions = array<i32: 1>} : vector<16x16xi32>
    %18 = arith.sitofp %17 : vector<16x16xi32> to vector<16x16xf32>
    %cst_7 = arith.constant 5.000000e-01 : f32
    %19 = vector.broadcast %cst_7 : f32 to vector<16x16xf32>
    %20 = arith.addf %16, %19 : vector<16x16xf32>
    %cst_8 = arith.constant 1.250000e-01 : f32
    %21 = vector.broadcast %cst_8 : f32 to vector<16x16xf32>
    %22 = arith.mulf %20, %21 : vector<16x16xf32>
    %23 = math.floor %22 : vector<16x16xf32>
    %cst_9 = arith.constant 5.000000e-01 : f32
    %24 = vector.broadcast %cst_9 : f32 to vector<16x16xf32>
    %25 = arith.addf %18, %24 : vector<16x16xf32>
    %cst_10 = arith.constant 1.250000e-01 : f32
    %26 = vector.broadcast %cst_10 : f32 to vector<16x16xf32>
    %27 = arith.mulf %25, %26 : vector<16x16xf32>
    %28 = math.floor %27 : vector<16x16xf32>
    %29 = arith.cmpf oeq, %23, %28 : vector<16x16xf32>
    %cst_11 = arith.constant 1.250000e-01 : f32
    %cst_12 = arith.constant 0.000000e+00 : f32
    %30 = vector.broadcast %cst_11 : f32 to vector<16x16xf32>
    %31 = vector.broadcast %cst_12 : f32 to vector<16x16xf32>
    %32 = arith.select %29, %30, %31 : vector<16x16xi1>, vector<16x16xf32>
    %cst_13 = arith.constant dense<0.000000e+00> : vector<16x32xf32>
    %33 = tpu.matmul %32, %14, %cst_13 {dimension_numbers = #tpu.dot_dimension_numbers<[1], [0], [0], [1], [0, 0, 1, 1], [], []>} : vector<16x16xf32>, vector<16x32xf32>, vector<16x32xf32> -> vector<16x32xf32>
    %34 = arith.mulf %0, %33 : vector<16x32xf32>
    %c0_14 = arith.constant 0 : index
    %c0_15 = arith.constant 0 : index
    %35 = vector.load %arg3[%c0_14, %c0_15] : memref<16x32xf32, #tpu.memory_space<vmem>>, vector<16x32xf32>
    tpu.vector_store %arg3[%c0_14, %c0_15], %34 {strides = array<i32>} : memref<16x32xf32, #tpu.memory_space<vmem>>, vector<16x32xf32>,
    return
  }
}

</mosaic_0001>

<bundles_post_ra>
// kernel: attention_module.1
= control target key start
LH: loop header
LB: loop body
LE: loop exit
PB: predicated region body
PF: predicated region fallthrough
CT: control target
= control target key end

     0   :  { %8 = vsyncpa [#allocation3], 0  ;;  %s530_s0 = inlined_call_operand.hbm [shape: f32[16,32], index: 0, kind: input, shape index: {}]   ;;  %s531_s1 = inlined_call_operand.hbm [shape: f32[32,32], index: 1, kind: input, shape index: {}]   ;;  %s532_s2 = inlined_call_operand.vmem [shape: f32[1,32], index: 2, kind: input, shape index: {}]   ;;  %s533_s3 = inlined_call_operand.hbm [shape: f32[16,32], index: 3, kind: output, shape index: {}]  }
   0x1   :  { %9 = vsyncpa [#allocation6], 0 }
   0x2   :  { %10 = vsyncpa [#allocation4], 0  ;;  %s436_s12 = smov [#allocation2]   ;;  %s364_s16 = scalar_lea.hbm %s530_s0, 256 }
   0x3   :  { %s16_s13 = sshll.u32 %s436_s12, 4  ;;  %p365_p0 = scmp.ne.s32.totalorder %s530_s0, %s364_s16  ;;  %s17_s13 = int_to_ptr.vmem [resolvable:$true] %s16_s13 }
   0x4   :  { %p368_p1 = scmp.lt.u32.totalorder %s364_s16, %s530_s0 }
   0x6   :  { %p370_p2 = pnand %p368_p1, %p365_p0 }
   0x8   :  { %373 = shalt.err (!%p370_p2)
}
   0x9   :  { %s374_s21 = scalar_lea.vmem %s17_s13, 256  ;;  %p379_p4 = scmp.lt.s32.totalorder %s17_s13, %s17_s13 }
   0xa   :  { %p375_p3 = scmp.ne.s32.totalorder %s17_s13, %s374_s21  ;;  %p380_p5 = scmp.lt.s32.totalorder %s374_s21, %s374_s21 }
   0xc   :  { %p381_p6 = por %p380_p5, %p379_p4 }
   0xe   :  { %p382_p7 = pnand %p381_p6, %p375_p3 }
  0x10   :  { %385 = shalt.err (!%p382_p7)
}
  0x11   :  { %s437_s22 = smov 128   ;;  %s438_s23 = smov 8  }
  0x12   :  { %22 = dma.hbm_to_vmem [thread:$0]  %s530_s0, 256, %s17_s13, [#allocation3], %s437_s22, %s437_s22, %s438_s23  }
  0x13   :  { %s439_s26 = smov [#allocation5]   ;;  %s386_s30 = scalar_lea.hbm %s531_s1, 512 }
  0x14   :  { %s28_s27 = sshll.u32 %s439_s26, 4  ;;  %p387_p8 = scmp.ne.s32.totalorder %s531_s1, %s386_s30  ;;  %s29_s27 = int_to_ptr.vmem [resolvable:$true] %s28_s27 }
  0x15   :  { %p390_p9 = scmp.lt.u32.totalorder %s386_s30, %s531_s1 }
  0x17   :  { %p392_p10 = pnand %p390_p9, %p387_p8 }
  0x19   :  { %395 = shalt.err (!%p392_p10)
}
  0x1a   :  { %s396_s8 = scalar_lea.vmem %s29_s27, 512  ;;  %p401_p12 = scmp.lt.s32.totalorder %s29_s27, %s29_s27 }
  0x1b   :  { %p397_p11 = scmp.ne.s32.totalorder %s29_s27, %s396_s8  ;;  %p402_p13 = scmp.lt.s32.totalorder %s396_s8, %s396_s8 }
  0x1d   :  { %p403_p0 = por %p402_p13, %p401_p12 }
  0x1f   :  { %p404_p1 = pnand %p403_p0, %p397_p11 }
  0x21   :  { %407 = shalt.err (!%p404_p1)
}
  0x22   :  { %34 = dma.hbm_to_vmem [thread:$0]  %s531_s1, 512, %s29_s27, [#allocation6], %s437_s22, %s437_s22, %s438_s23  }
  0x23   :  { %430 = dma.done.wait [#allocation3], 256  }
  0x24   :  { %431 = vsyncadd [#allocation3], 4294967040 }
  0x25   :  { %432 = dma.done.wait [#allocation6], 512  }
  0x26   :  { %433 = vsyncadd [#allocation6], 4294966784  ;;  %vm56_vm0 = vcmask 261120   ;;  %v45_v0 = vld [vmem:[#allocation5] sm:$0xff]  ;;  %v46_v1 = vld [vmem:[#allocation5 + $0x8] sm:$0xff]  ;;  %v172_v25 = vlaneseq  ;;  %vm193_vm3 = vcmask 130048  }
  0x27   :  { %vm335_vm1 = vmpackc.low %vm56_vm0, %vm56_vm0  ;;  %v47_v2 = vld [vmem:[#allocation5 + $0x10] sm:$0xff]  ;;  %v334_v3 = vpack.c.bf16 %v46_v1, %v45_v0  ;;  %v48_v4 = vld [vmem:[#allocation5 + $0x18] sm:$0xff]  ;;  %v440_v41 = vmov 0.0  }
  0x28   :  { %v494_v5 = vld [vmem:[#allocation2] sm:$0xff]  ;;  %v340_v6 = vpack.c.bf16 %v48_v4, %v47_v2  ;;  %v498_v7 = vld [vmem:[#allocation2 + $0x8] sm:$0xff]  ;;  %v173_v26 = vshrl.u32 %v172_v25, 7  ;;  %v178_v27 = vand.u32 127, %v172_v25 }
  0x29   :  { %324 = vmatprep.mubr.msk.f32.mxu0 %vm56_vm0, %v494_v5  ;;  %336 = vmatprep.subr.msk.bf16.mxu0 %vm335_vm1, %v334_v3  ;;  %v297_v8 = vld [vmem:[%s532_s2] ss:$0 sm:$0xff]  ;;  %s441_s2 = smov [#allocation7]  }
  0x2a   :  { %339 = vmatpush3.bf16.xpose.msk.msra.mxu0 %vm335_vm1, %v334_v3  ;;  %v174_v28 = vadd.s32 8, %v173_v26  ;;  %v175_v29 = vcvt.s32.f32 %v173_v26  ;;  %v179_v30 = vcvt.s32.f32 %v178_v27  ;;  %s284_s11 = sshll.u32 %s441_s2, 4  ;;  %s285_s11 = int_to_ptr.vmem [resolvable:$true] %s284_s11 }
  0x2b   :  { %342 = vmatprep.subr.msk.bf16.mxu0 %vm335_vm1, %v340_v6  ;;  %s408_s12 = scalar_lea.vmem %s285_s11, 256  ;;  %p413_p3 = scmp.lt.s32.totalorder %s285_s11, %s285_s11 }
  0x2c   :  { %v176_v31 = vcvt.s32.f32 %v174_v28  ;;  %v180_v32 = vadd.f32 0.5, %v175_v29  ;;  %v186_v33 = vadd.f32 0.5, %v179_v30  ;;  %p409_p2 = scmp.ne.s32.totalorder %s285_s11, %s408_s12  ;;  %p414_p4 = scmp.lt.s32.totalorder %s408_s12, %s408_s12 }
  0x2e   :  { %v181_v34 = vadd.f32 0.5, %v176_v31  ;;  %v182_v35 = vmul.f32 0.125, %v180_v32  ;;  %v187_v36 = vmul.f32 0.125, %v186_v33  ;;  %p415_p5 = por %p414_p4, %p413_p3 }
  0x30   :  { %v183_v37 = vmul.f32 0.125, %v181_v34  ;;  %v184_v38 = vfloor.f32 %v182_v35  ;;  %v188_v39 = vfloor.f32 %v187_v36  ;;  %p416_p6 = pnand %p415_p5, %p409_p2 }
  0x32   :  { %345 = vmatpush3.bf16.xpose.msk.msra.mxu0 %vm335_vm1, %v340_v6  ;;  %v185_v40 = vfloor.f32 %v183_v37  ;;  %vm189_vm2 = vcmp.eq.f32.partialorder %v184_v38, %v188_v39 }
  0x33   :  { %v191_v42 = vsel %vm189_vm2, 0.125, %v440_v41 }
  0x34   :  { %vm190_vm4 = vcmp.eq.f32.partialorder %v185_v40, %v188_v39  ;;  %331 = vmatprep.mubr.msk.f32.mxu1 %vm193_vm3, %v191_v42 }
  0x35   :  { %v192_v43 = vsel %vm190_vm4, 0.125, %v440_v41 }
  0x39   :  { %325 = vmatmul.mubr.msk.f32.vlgmr.msra.gmra.mrb[0].mxu0 %vm56_vm0, %v498_v7 }
 0x10c   :  { %v326_v9 = vpop.f32.mrb[0].mxu0 }
 0x10d   :  { %v141_v10 = vpop.f32.mrb[1].mxu0  ;;  %v147_v12 = vadd.f32 %v326_v9, %v297_v8 }
 0x10e   :  { %v142_v11 = vadd.f32 %v297_v8, %v141_v10 }
 0x10f   :  { %v153_v14 = vsel %vm56_vm0, %v147_v12, -inf }
 0x110   :  { %v150_v13 = vsel %vm56_vm0, %v142_v11, -inf }
 0x111   :  { %151 = vmax.xlane.f32.xlu0 %v150_v13 }
 0x115   :  { %154 = vmax.xlane.f32.xlu0 %v153_v14 }
 0x19e   :  { %v152_v15 = vpop.xlane.xlu0 %151 }
 0x19f   :  { %v156_v16 = vsub.f32 %v142_v11, %v152_v15 }
 0x1a1   :  { %v158_v17 = vmul.f32 1.442695, %v156_v16 }
 0x1a2   :  { %v155_v18 = vpop.xlane.xlu0 %154 }
 0x1a3   :  { %356 = vpow2.f32 %v158_v17  ;;  %v157_v19 = vsub.f32 %v147_v12, %v155_v18 }
 0x1a5   :  { %v160_v20 = vmul.f32 1.442695, %v157_v19 }
 0x1a7   :  { %358 = vpow2.f32 %v160_v20 }
 0x1ad   :  { %v357_v21 = vpop.eup %356 }
 0x1ae   :  { %v162_v22 = vsel %vm56_vm0, %v357_v21, 0.0 }
 0x1af   :  { %163 = vadd.xlane.f32.xlu1 %v162_v22 }
 0x1b1   :  { %v359_v23 = vpop.eup %358 }
 0x1b2   :  { %v165_v24 = vsel %vm56_vm0, %v359_v23, 0.0 }
 0x1b3   :  { %166 = vadd.xlane.f32.xlu1 %v165_v24 }
 0x23c   :  { %v164_v44 = vpop.xlane.xlu1 %163 }
 0x23d   :  { %360 = vrcp.f32 %v164_v44 }
 0x240   :  { %v167_v45 = vpop.xlane.xlu1 %166 }
 0x241   :  { %362 = vrcp.f32 %v167_v45 }
 0x247   :  { %v361_v46 = vpop.eup %360 }
 0x248   :  { %v169_v48 = vmul.f32 %v361_v46, %v357_v21 }
 0x24b   :  { %v363_v47 = vpop.eup %362 }
 0x24c   :  { %v171_v49 = vmul.f32 %v363_v47, %v359_v23 }
 0x24e   :  { %v346_v50 = vpack.c.bf16 %v171_v49, %v169_v48 }
 0x250   :  { %347 = vmatprep.subr.bf16.mxu1 %v346_v50 }
 0x251   :  { %349 = vmatpush3.bf16.msra.mxu1 %v346_v50 }
 0x254   :  { %332 = vmatmul.mubr.msk.f32.vlgmr.msra.gmra.mrb[0].mxu1 %vm193_vm3, %v192_v43 }
 0x327   :  { %v333_v51 = vpop.f32.mrb[0].mxu1 }
 0x328   :  { %v276_v52 = vmul.f32 %v333_v51, %v498_v7  ;;  %v266_v53 = vpop.f32.mrb[1].mxu1 }
 0x329   :  { %v275_v54 = vmul.f32 %v266_v53, %v494_v5 }
 0x32a   :  { %278 = vst.msk [vmem:[#allocation7 + $0x8] sm:$0xff] %vm56_vm0, %v276_v52 }
 0x32b   :  { %277 = vst.msk [vmem:[#allocation7] sm:$0xff] %vm56_vm0, %v275_v54 }
 0x32c   :  { %419 = shalt.err (!%p416_p6)
}
 0x32d   :  { %s420_s15 = scalar_lea.hbm %s533_s3, 256 }
 0x32e   :  { %p421_p7 = scmp.ne.s32.totalorder %s533_s3, %s420_s15  ;;  %p424_p8 = scmp.lt.u32.totalorder %s420_s15, %s533_s3 }
 0x330   :  { %p426_p9 = pnand %p424_p8, %p421_p7 }
 0x332   :  { %429 = shalt.err (!%p426_p9)
}
 0x333   :  { %290 = dma.vmem_to_hbm [thread:$0]  %s285_s11, 256, %s533_s3, [#allocation4], %s437_s22, %s437_s22, %s438_s23  }
 0x334   :  { %434 = dma.done.wait [#allocation4], 256  }
 0x335   :  { %435 = vsyncadd [#allocation4], 4294967040 }
 0x336   :  { %294 = vsyncpa [#allocation3], 1 }
 0x337   :  { %295 = vsyncpa [#allocation6], 1 }
 0x338   :  { %296 = vsyncpa [#allocation4], 1 }

</bundles_post_ra>
